<compile_context>
chip_gen: v7x
topology: tpu7x:2x2x1
jax: 0.10.0
libtpu: 0.0.40
codegen_flags: <defaults>
</compile_context>

<pallas_src>
import jax
import jax.numpy as jnp
from jax.experimental import pallas as pl
from jax.experimental.pallas import tpu as pltpu

LN_EPS = 1e-5


def add_channel_last_kernel(x_ref, wbd_ref, gb_ref, o_ref):
    # x_ref:   (R, W)  R = tn*C rows (tn batches x C channels), W = out_feature (lane dim)
    # wbd_ref: (R, R)  block-diagonal 1x1-conv weight, resident across all grid steps
    # gb_ref:  (2, W)  row 0 = LayerNorm gamma, row 1 = LayerNorm beta (resident)
    # o_ref:   (R, W)
    x = x_ref[...].astype(jnp.float32)

    # 1x1 conv for all tn batches in this block as ONE MXU matmul (block-diagonal mix).
    y = jnp.dot(wbd_ref[...], x, preferred_element_type=jnp.float32)      # (R, W)

    # Two-pass LayerNorm over the last dim (== out_feature), f32 accumulation.
    inv_w = 1.0 / float(y.shape[-1])
    mean = jnp.sum(y, axis=-1, keepdims=True) * inv_w                     # (R, 1)
    d = y - mean
    var = jnp.sum(d * d, axis=-1, keepdims=True) * inv_w                  # (R, 1)
    inv = jax.lax.rsqrt(var + LN_EPS)

    gamma = gb_ref[0:1, :]                                                # (1, W)
    beta = gb_ref[1:2, :]                                                 # (1, W)
    o_ref[...] = (d * inv * gamma + beta).astype(o_ref.dtype)             # lane-dense store


def _pick_batch_tile(n, c, w, itemsize, *, max_tile=32, min_steps=4,
                     vmem_budget_bytes=12 << 20):
    """Batches per grid step.

    - >= `min_steps` grid steps when N allows: overlaps DMA with compute and gives v7x's two
      TensorCores something to split on the "parallel" grid axis.
    - <= `max_tile`: keeps the block-diagonal matmul's wasted MACs well under the per-step
      DMA time and keeps the double-buffered working set tiny on v5e/v6e/v7x alike.
    - VMEM guard for pathologically large C*W (in + out blocks, double buffered).
    """
    per_batch = c * w * itemsize
    cap_vmem = max(1, vmem_budget_bytes // (4 * per_batch))
    tile = max(1, min(max_tile, cap_vmem, pl.cdiv(n, min_steps)))
    if (tile * c) % 8 != 0:
        # Block row-dim must be a multiple of 8 (sublane) unless it spans the full array;
        # for odd channel counts fall back to a single full block.
        tile = n
    return tile


def add_channel_last(x_nchw, conv_w, conv_b, ln_gamma, ln_beta):
    """x_nchw: (N, C, 1, W). conv_w: (C, C, 1, 1). conv_b: (C,). ln_gamma/ln_beta: (W,)."""
    N, C, H, W = x_nchw.shape
    assert H == 1, "AddChannelLast requires H == 1 (x.squeeze(2))"

    x2 = x_nchw.reshape(N * C, W)                       # squeeze H + flatten batch rows (view)
    w2d = conv_w.reshape(C, C).astype(jnp.float32)      # hoisted cast
    del conv_b  # exact no-op under LayerNorm's mean subtraction over W (see header comment)

    tn = _pick_batch_tile(N, C, W, x2.dtype.itemsize)   # N=2 here -> tn=1, grid=(2,)
    R = tn * C
    grid = (pl.cdiv(N, tn),)

    # Block-diagonal conv weight: one (R,R)@(R,W) dot mixes channels of all tn batches at once.
    wbd = jnp.kron(jnp.eye(tn, dtype=jnp.float32), w2d)                       # (R, R)
    gb = jnp.stack([ln_gamma.astype(jnp.float32), ln_beta.astype(jnp.float32)])  # (2, W)

    out = pl.pallas_call(
        add_channel_last_kernel,
        out_shape=jax.ShapeDtypeStruct((N * C, W), x2.dtype),
        grid_spec=pltpu.PrefetchScalarGridSpec(
            num_scalar_prefetch=0,
            grid=grid,
            in_specs=[
                pl.BlockSpec((R, W), lambda i: (i, 0)),    # x rows for tn batches
                pl.BlockSpec((R, R), lambda i: (0, 0)),    # block-diag conv weight (resident)
                pl.BlockSpec((2, W), lambda i: (0, 0)),    # [gamma; beta] (resident)
            ],
            out_specs=pl.BlockSpec((R, W), lambda i: (i, 0)),
        ),
        compiler_params=pltpu.CompilerParams(
            dimension_semantics=("parallel",),
        ),
    )(x2, wbd, gb)
    return out.reshape(N, C, W)


def reference(x_nchw, conv_w, conv_b, ln_gamma, ln_beta):
    # Pure-JAX reference matching the PyTorch module exactly (conv bias included).
    N, C, H, W = x_nchw.shape
    x = x_nchw.reshape(N, C, W)
    w2d = conv_w.reshape(C, C)
    y = jnp.einsum("oc,ncw->now", w2d, x) + conv_b.reshape(1, C, 1)
    mean = jnp.mean(y, axis=-1, keepdims=True)
    var = jnp.mean((y - mean) ** 2, axis=-1, keepdims=True)
    y = (y - mean) * jax.lax.rsqrt(var + LN_EPS)
    return y * ln_gamma.reshape(1, 1, W) + ln_beta.reshape(1, 1, W)


if __name__ == "__main__":
    # Small shapes consistent with the module: batch=2, out_c=8, H=1, out_feature=128
    N, C, W = 2, 8, 128
    key = jax.random.PRNGKey(0)
    k_x, k_w, k_b, k_g, k_be = jax.random.split(key, 5)

    x = jax.random.normal(k_x, (N, C, 1, W), dtype=jnp.float32)
    conv_w = jax.random.normal(k_w, (C, C, 1, 1), dtype=jnp.float32) * 0.1
    conv_b = jax.random.normal(k_b, (C,), dtype=jnp.float32) * 0.1
    ln_gamma = jnp.ones((W,), dtype=jnp.float32) + 0.05 * jax.random.normal(k_g, (W,), dtype=jnp.float32)
    ln_beta = 0.05 * jax.random.normal(k_be, (W,), dtype=jnp.float32)

    out = add_channel_last(x, conv_w, conv_b, ln_gamma, ln_beta)
    out = jax.block_until_ready(out)

    ref = reference(x, conv_w, conv_b, ln_gamma, ln_beta)
    assert out.shape == (N, C, W), out.shape
    assert jnp.allclose(out, ref, atol=1e-4, rtol=1e-4), float(jnp.max(jnp.abs(out - ref)))

    print("KERNEL_OK")
</pallas_src>

<mosaic_0001>
module attributes {stable_mosaic.version = 11 : i64} {
  func.func @add_channel_last_kernel(%arg0: i32, %arg1: memref<8x128xf32, #tpu.memory_space<vmem>>, %arg2: memref<8x8xf32, #tpu.memory_space<vmem>>, %arg3: memref<2x128xf32, #tpu.memory_space<vmem>>, %arg4: memref<8x128xf32, #tpu.memory_space<vmem>>) attributes {dimension_semantics = [#tpu.dimension_semantics<parallel>], iteration_bounds = array<i64: 2>, scalar_prefetch = 0 : i64, scratch_operands = 0 : i64, tpu.core_type = #tpu.core_type<tc>, window_params = [{transform_indices = @transform_0, window_bounds = array<i64: 8, 128>}, {pipeline_mode = #tpu.pipeline_mode<synchronous>, transform_indices = @transform_1, window_bounds = array<i64: 8, 8>}, {pipeline_mode = #tpu.pipeline_mode<synchronous>, transform_indices = @transform_2, window_bounds = array<i64: 2, 128>}, {transform_indices = @transform_3, window_bounds = array<i64: 8, 128>}]} {
    %c0 = arith.constant 0 : index
    %c0_0 = arith.constant 0 : index
    %0 = vector.load %arg1[%c0, %c0_0] : memref<8x128xf32, #tpu.memory_space<vmem>>, vector<8x128xf32>
    %c0_1 = arith.constant 0 : index
    %c0_2 = arith.constant 0 : index
    %1 = vector.load %arg2[%c0_1, %c0_2] : memref<8x8xf32, #tpu.memory_space<vmem>>, vector<8x8xf32>
    %cst = arith.constant dense<0.000000e+00> : vector<8x128xf32>
    %2 = tpu.matmul %1, %0, %cst {dimension_numbers = #tpu.dot_dimension_numbers<[1], [0], [0], [1], [0, 0, 1, 1], [], []>} : vector<8x8xf32>, vector<8x128xf32>, vector<8x128xf32> -> vector<8x128xf32>
    %cst_3 = arith.constant dense<0.000000e+00> : vector<8xf32>
    %3 = vector.multi_reduction <add>, %2, %cst_3 [1] : vector<8x128xf32> to vector<8xf32>
    %4 = vector.shape_cast %3 : vector<8xf32> to vector<8x1xf32>
    %cst_4 = arith.constant 7.812500e-03 : f32
    %5 = vector.broadcast %cst_4 : f32 to vector<8x1xf32>
    %6 = arith.mulf %4, %5 : vector<8x1xf32>
    %7 = vector.broadcast %6 : vector<8x1xf32> to vector<8x128xf32>
    %8 = arith.subf %2, %7 : vector<8x128xf32>
    %9 = arith.mulf %8, %8 : vector<8x128xf32>
    %cst_5 = arith.constant dense<0.000000e+00> : vector<8xf32>
    %10 = vector.multi_reduction <add>, %9, %cst_5 [1] : vector<8x128xf32> to vector<8xf32>
    %11 = vector.shape_cast %10 : vector<8xf32> to vector<8x1xf32>
    %cst_6 = arith.constant 7.812500e-03 : f32
    %12 = vector.broadcast %cst_6 : f32 to vector<8x1xf32>
    %13 = arith.mulf %11, %12 : vector<8x1xf32>
    %cst_7 = arith.constant 9.99999974E-6 : f32
    %14 = vector.broadcast %cst_7 : f32 to vector<8x1xf32>
    %15 = arith.addf %13, %14 : vector<8x1xf32>
    %16 = math.rsqrt %15 : vector<8x1xf32>
    %c0_8 = arith.constant 0 : index
    %c0_9 = arith.constant 0 : index
    %17 = vector.load %arg3[%c0_8, %c0_9] : memref<2x128xf32, #tpu.memory_space<vmem>>, vector<1x128xf32>
    %c1 = arith.constant 1 : index
    %c0_10 = arith.constant 0 : index
    %18 = vector.load %arg3[%c1, %c0_10] : memref<2x128xf32, #tpu.memory_space<vmem>>, vector<1x128xf32>
    %19 = vector.broadcast %16 : vector<8x1xf32> to vector<8x128xf32>
    %20 = arith.mulf %8, %19 : vector<8x128xf32>
    %21 = vector.broadcast %17 : vector<1x128xf32> to vector<8x128xf32>
    %22 = arith.mulf %20, %21 : vector<8x128xf32>
    %23 = vector.broadcast %18 : vector<1x128xf32> to vector<8x128xf32>
    %24 = arith.addf %22, %23 : vector<8x128xf32>
    %c0_11 = arith.constant 0 : index
    %c0_12 = arith.constant 0 : index
    %25 = vector.load %arg4[%c0_11, %c0_12] : memref<8x128xf32, #tpu.memory_space<vmem>>, vector<8x128xf32>
    tpu.vector_store %arg4[%c0_11, %c0_12], %24 {strides = array<i32>} : memref<8x128xf32, #tpu.memory_space<vmem>>, vector<8x128xf32>,
    return
  }
  func.func @transform_0(%arg0: i32) -> (i32, i32) {
    %c0_i32 = arith.constant 0 : i32
    %c0_i32_0 = arith.constant 0 : i32
    return %arg0, %c0_i32 : i32, i32
  }
  func.func @transform_1(%arg0: i32) -> (i32, i32) {
    %c0_i32 = arith.constant 0 : i32
    %c0_i32_0 = arith.constant 0 : i32
    %c0_i32_1 = arith.constant 0 : i32
    return %c0_i32, %c0_i32_0 : i32, i32
  }
  func.func @transform_2(%arg0: i32) -> (i32, i32) {
    %c0_i32 = arith.constant 0 : i32
    %c0_i32_0 = arith.constant 0 : i32
    %c0_i32_1 = arith.constant 0 : i32
    return %c0_i32, %c0_i32_0 : i32, i32
  }
  func.func @transform_3(%arg0: i32) -> (i32, i32) {
    %c0_i32 = arith.constant 0 : i32
    %c0_i32_0 = arith.constant 0 : i32
    return %arg0, %c0_i32 : i32, i32
  }
}

</mosaic_0001>

<bundles_post_ra>
// kernel: tpu_custom_call.1
= control target key start
LH: loop header
LB: loop body
LE: loop exit
PB: predicated region body
PF: predicated region fallthrough
CT: control target
= control target key end

     0   :  { %8 = vsyncpa [#allocation3], 0  ;;  %s844_s0 = inlined_call_operand.hbm [shape: f32[16,128], index: 0, kind: input, shape index: {}]   ;;  %s845_s1 = inlined_call_operand.hbm [shape: f32[8,8], index: 1, kind: input, shape index: {}]   ;;  %s846_s2 = inlined_call_operand.vmem [shape: f32[2,128], index: 2, kind: input, shape index: {}]   ;;  %s847_s3 = inlined_call_operand.hbm [shape: f32[16,128], index: 3, kind: output, shape index: {}]  }
   0x1   :  { %10 = vsyncpa [#allocation3 + $0x1], 0 }
   0x2   :  { %11 = vsyncpa [#allocation6], 0 }
   0x3   :  { %12 = vsyncpa [#allocation4], 0 }
   0x4   :  { %14 = vsyncpa [#allocation4 + $0x1], 0  ;;  %s633_s12 = smov 0   ;;  %s635_s13 = smov 0  }
   0x5   :  { %s637_s14 = smov 0   ;;  %s639_s15 = smov 0  }
   0x6 LB: > { %s654_s16 = sadd.s32 4294967295, %s606_s15   ;;  %s393_s17 = sadd.s32 4294967294, %s606_s15   ;;  %s606_s15 = sphi %s639_s15, %s871_s15   ;;  %s602_s14 = sphi %s637_s14, %s870_s14   ;;  %s598_s13 = sphi %s635_s13, %s869_s13   ;;  %s594_s12 = sphi %s633_s12, %s868_s12  }
   0x7   : > { %p40_p0 = scmp.ne.s32.totalorder %s598_s13, %s594_s12  ;;  %p848_p1 = scmp.eq.s32.totalorder %s654_s16, 0 }
   0x8   : > { %p112_p3 = scmp.eq.s32.totalorder %s393_s17, 1  ;;  %p394_p5 = scmp.ge.s32.totalorder %s606_s15, 1 }
   0x9   : > { %p663_p4 = por %p848_p1, %p40_p0  ;;  %p119_p7 = scmp.lt.s32.totalorder %s606_s15, 3 }
   0xa   : > { %p668_p6 = por %p112_p3, %p40_p0  ;;  %s608_s21 = smov [#allocation5]  }
   0xb   : > { %s851_s18 = scalar_select %p663_p4, 1, 0 }
   0xc   : > { %s852_s19 = scalar_select %p668_p6, 1, 0 }
   0xd   : > { %p673_p8 = pnand %p394_p5, %p119_p7  ;;  %s132_s22 = sshll.u32 %s608_s21, 4  ;;  %s133_s22 = int_to_ptr.vmem [resolvable:$true] %s132_s22 }
   0xe   : > { %s681_s23 = sadd.s32 1, %s606_s15   ;;  %s27_s27 = sadd.s32 1, %s602_s14 }
   0xf   : > { %s853_s20 = scalar_select %p673_p8, 1, 0 }
  0x10   : > { %p425_p10 = pneg %p673_p8  ;;  %s24_s25 = ssub.s32 %s606_s15, %s681_s23 }
  0x11   : > { %p691_p12 = scmp.eq.s32.totalorder %s24_s25, 0  ;;  %s478_s30 = scalar_lea.hbm %s845_s1, 128 }
  0x12   : > { %p685_p11 = pnand %p425_p10, %p848_p1  ;;  %p479_p0 = scmp.ne.s32.totalorder %s845_s1, %s478_s30 }
  0x13   : > { %s855_s26 = scalar_select %p691_p12, 1, 0 }
  0x14   : > { %p480_p3 = pneg %p685_p11  ;;  %p485_p10 = scmp.lt.u32.totalorder %s478_s30, %s845_s1 }
  0x16   : > { %p481_p5 = pnand %p480_p3, %p479_p0 }
  0x18   : > { %p482_p7 = pneg %p481_p5 }
  0x1a   : > { %p487_p9 = pnand %p485_p10, %p482_p7 }
  0x1c   : > { %490 = shalt.err (!%p487_p9)
}
  0x1d   : > { %s491_s8 = scalar_lea.vmem %s133_s22, 128  ;;  %p499_p6 = scmp.lt.s32.totalorder %s133_s22, %s133_s22 }
  0x1e   : > { %p492_p1 = scmp.ne.s32.totalorder %s133_s22, %s491_s8  ;;  %p500_p4 = scmp.lt.s32.totalorder %s491_s8, %s491_s8 }
  0x20   : > { %p494_p2 = pnand %p492_p1, %p480_p3  ;;  %p501_p8 = por %p500_p4, %p499_p6 }
  0x22   : > { %p495_p13 = pneg %p494_p2 }
  0x24   : > { %p502_p12 = pnand %p501_p8, %p495_p13 }
  0x26   : > { %505 = shalt.err (!%p502_p12)
}
  0x27   : > { %428 = dma.hbm_to_vmem [thread:$0]  (!%p685_p11), %s845_s1, 128, %s133_s22, [#allocation6]  }
  0x28   : > { %p856_p1 = scmp.ne.s32.totalorder %s855_s26, 0  ;;  %p35_p2 = scmp.eq.s32.totalorder %s606_s15, 0 }
  0x29   : > { %p857_p4 = scmp.ne.s32.totalorder %s602_s14, %s598_s13  ;;  %p858_p6 = scmp.eq.s32.totalorder %s654_s16, 1 }
  0x2a   : > { %s717_s11 = scalar_select %p856_p1, %s602_s14, %s27_s27  }
  0x2b   : > { %p725_p8 = por %p858_p6, %p857_p4  ;;  %p438_p9 = scmp.lt.s32.totalorder %s606_s15, 2 }
  0x2c   : > { %s146_s21 = sand.u32 1, %s602_s14   ;;  %p860_p12 = pmov %p857_p4 }
  0x2d   : > { %s397_s24 = sshll.u32 %s146_s21, 3  ;;  %s398_s25 = sshll.u32 %s606_s15, 7 }
  0x2e   : > { %p36_p13 = por %p35_p2, %p860_p12  ;;  %s738_s22 = scalar_lea.hbm %s844_s0, %s398_s25 }
  0x2f   : > { %s150_s26 = scalar_lea.vmem [#allocation2], %s397_s24  ;;  %s147_s4 = scalar_lea.sflag [#allocation3], %s146_s21 }
  0x30   : > { %s157_s27 = sshll.u32 %s150_s26, 4  ;;  %p740_p11 = pnand %p438_p9, %p36_p13  ;;  %s744_s27 = int_to_ptr.vmem [resolvable:$true] %s157_s27 }
  0x31   : > { %s506_s5 = scalar_lea.hbm %s738_s22, 128  ;;  %s511_s8 = scalar_lea.hbm %s844_s0, 256 }
  0x32   : > { %p507_p0 = scmp.ne.s32.totalorder %s738_s22, %s506_s5  ;;  %p508_p3 = pneg %p740_p11 }
  0x33   : > { %p512_p10 = scmp.lt.u32.totalorder %s738_s22, %s844_s0  ;;  %p513_p1 = scmp.lt.u32.totalorder %s511_s8, %s506_s5 }
  0x34   : > { %p509_p5 = pnand %p508_p3, %p507_p0  ;;  %p515_p4 = scmp.lt.u32.totalorder %s506_s5, %s738_s22 }
  0x35   : > { %p514_p2 = por %p513_p1, %p512_p10 }
  0x36   : > { %p510_p7 = pneg %p509_p5 }
  0x37   : > { %p516_p6 = por %p515_p4, %p514_p2 }
  0x39   : > { %p517_p9 = pnand %p516_p6, %p510_p7 }
  0x3b   : > { %520 = shalt.err (!%p517_p9)
}
  0x3c   : > { %s521_s21 = scalar_lea.vmem %s744_s27, 128  ;;  %s609_s24 = smov [#allocation2]  }
  0x3d   : > { %p522_p12 = scmp.ne.s32.totalorder %s744_s27, %s521_s21  ;;  %s526_s25 = sshll.u32 %s609_s24, 4  ;;  %s527_s25 = int_to_ptr.vmem [resolvable:$false] %s526_s25 }
  0x3e   : > { %s528_s28 = scalar_lea.vmem %s527_s25, 256  ;;  %p529_p5 = scmp.lt.s32.totalorder %s744_s27, %s527_s25 }
  0x3f   : > { %p524_p13 = pnand %p522_p12, %p508_p3  ;;  %p530_p10 = scmp.lt.s32.totalorder %s528_s28, %s521_s21 }
  0x41   : > { %p525_p0 = pneg %p524_p13  ;;  %p531_p1 = por %p530_p10, %p529_p5 }
  0x43   : > { %p532_p2 = pnand %p531_p1, %p525_p0 }
  0x45   : > { %535 = shalt.err (!%p532_p2)
}
  0x46   : > { %432 = dma.hbm_to_vmem [thread:$0]  (!%p740_p11), %s738_s22, 128, %s744_s27, %s147_s4  }
  0x47   : > { %p862_p7 = scmp.ne.s32.totalorder %s853_s20, 0 }
  0x48   : > { %s774_s29 = sand.u32 (!%p862_p7), 1, %s598_s13   ;;  %p863_p3 = scmp.ne.s32.totalorder (!%p862_p7), %s851_s18, 0 }
  0x49   : > { %166 = sbr.rel (%p862_p7) target bundleno = 624 (0x270), region = 32  ;;  %s400_s26 = sshll.u32 (!%p862_p7), %s774_s29, 3 }
  0x4a   : > { %s169_s5 = scalar_lea.sflag (!%p862_p7), [#allocation3], %s774_s29  ;;  %s172_s6 = scalar_lea.vmem (!%p862_p7), [#allocation2], %s400_s26 }
  0x50   : > { %581 = dma.done.wait (%p863_p3), %s169_s5, 128  }
  0x51   : > { %583 = vsyncadd (%p863_p3), %s169_s5, 4294967168  ;;  %p864_p11 = scmp.eq.s32.totalorder %s654_s16, 0 }
  0x53   : > { %585 = dma.done.wait (%p864_p11), [#allocation6], 128   ;;  %p865_p4 = pmov %p864_p11 }
  0x54   : > { %v610_v0 = vmov 0.0   ;;  %vm611_vm0 = vmmov 0   ;;  %vm201_vm1 = vcmask 64512   ;;  %v199_v1 = vld [vmem:[%s172_s6] sm:$0xff]  ;;  %v200_v2 = vld [vmem:[#allocation5] sm:$0xff]  ;;  %s407_s30 = sshll.u32 %s654_s16, 7 }
  0x55   : > { %587 = vsyncadd (%p865_p4), [#allocation6], 4294967168  ;;  %412 = vmatprep.subr.mxu0 %v610_v0  ;;  %414 = vmatprep.mubr.msk.f32.mxu0 %vm611_vm0, %v610_v0  ;;  %v404_v13 = vld [vmem:[%s846_s2] ss:$0 sm:$0xff]  ;;  %v405_v15 = vld [vmem:[%s846_s2 + $0x1] ss:$0 sm:$0xff]  ;;  %s800_s10 = scalar_lea.hbm %s847_s3, %s407_s30 }
  0x56   : > { %413 = vmatpush3.msra.mxu0 %v199_v1  ;;  %s198_s4 = scalar_lea.vmem [#allocation7], %s400_s26  ;;  %s300_s21 = scalar_lea.sflag [#allocation4], %s774_s29 }
  0x57   : > { %415 = vmatmul.mubr.msk.f32.vlgmr.msra.gmra.mrb[0].mxu0 %vm201_vm1, %v200_v2  ;;  %s313_s7 = sshll.u32 %s198_s4, 4  ;;  %s612_s16 = smov [#allocation7]   ;;  %s802_s7 = int_to_ptr.vmem [resolvable:$true] %s313_s7 }
  0x58   : > { %s536_s24 = scalar_lea.vmem %s802_s7, 128  ;;  %s540_s25 = sshll.u32 %s612_s16, 4  ;;  %s541_s25 = int_to_ptr.vmem [resolvable:$false] %s540_s25 }
  0x59   : > { %p537_p6 = scmp.ne.s32.totalorder %s802_s7, %s536_s24  ;;  %s542_s28 = scalar_lea.vmem %s541_s25, 256 }
  0x5a   : > { %p543_p13 = scmp.lt.s32.totalorder %s802_s7, %s541_s25  ;;  %p544_p0 = scmp.lt.s32.totalorder %s542_s28, %s536_s24 }
  0x5b   : > { %p538_p9 = pnand %p537_p6, %p725_p8 }
  0x5c   : > { %p545_p5 = por %p544_p0, %p543_p13 }
  0x5d   : > { %p539_p12 = pneg %p538_p9 }
  0x5f   : > { %p546_p10 = pnand %p545_p5, %p539_p12 }
 0x12a   : > { %v271_v3 = vpop.f32.mrb[0].mxu0 }
 0x12b   : > { %275 = vadd.xlane.f32.xlu0 %v271_v3  ;;  %v416_v4 = vpop.f32.mrb[1].mxu0 }
 0x1b8   : > { %v276_v5 = vpop.xlane.xlu0 %275 }
 0x1b9   : > { %v277_v6 = vmul.f32 0.0078125, %v276_v5 }
 0x1bb   : > { %v278_v7 = vsub.f32 %v271_v3, %v277_v6 }
 0x1bd   : > { %v279_v8 = vmul.f32 %v278_v7, %v278_v7 }
 0x1bf   : > { %280 = vadd.xlane.f32.xlu0 %v279_v8 }
 0x24c   : > { %v281_v9 = vpop.xlane.xlu0 %280 }
 0x24d   : > { %v282_v10 = vmul.f32 0.0078125, %v281_v9 }
 0x24f   : > { %v283_v11 = vadd.f32 1e-05, %v282_v10 }
 0x251   : > { %476 = vrsqrt.f32 %v283_v11 }
 0x25b   : > { %v477_v12 = vpop.eup %476 }
 0x25c   : > { %v287_v14 = vmul.f32 %v477_v12, %v278_v7 }
 0x25e   : > { %v292_v16 = vmul.f32 %v404_v13, %v287_v14 }
 0x260   : > { %v297_v17 = vadd.f32 %v405_v15, %v292_v16 }
 0x262   : > { %298 = vst [vmem:[%s198_s4] sm:$0xff] %v297_v17 }
 0x263   : > { %549 = shalt.err (!%p546_p10)
}
 0x264   : > { %s550_s29 = scalar_lea.hbm %s800_s10, 128  ;;  %s554_s6 = scalar_lea.hbm %s847_s3, 256 }
 0x265   : > { %p551_p1 = scmp.ne.s32.totalorder %s800_s10, %s550_s29  ;;  %p555_p3 = scmp.lt.u32.totalorder %s800_s10, %s847_s3 }
 0x266   : > { %p556_p11 = scmp.lt.u32.totalorder %s554_s6, %s550_s29  ;;  %p558_p6 = scmp.lt.u32.totalorder %s550_s29, %s800_s10 }
 0x267   : > { %p552_p2 = pnand %p551_p1, %p725_p8 }
 0x268   : > { %p557_p4 = por %p556_p11, %p555_p3 }
 0x269   : > { %p553_p7 = pneg %p552_p2 }
 0x26a   : > { %p559_p9 = por %p558_p6, %p557_p4 }
 0x26c   : > { %p560_p12 = pnand %p559_p9, %p553_p7 }
 0x26e   : > { %563 = shalt.err (!%p560_p12)
}
 0x26f   : > { %423 = dma.vmem_to_hbm [thread:$0]  (%p725_p8), %s802_s7, 128, %s800_s10, %s300_s21  }
 0x270 PF: > { %s325_s22 = sand.u32 1, %s594_s12   ;;  %p866_p13 = scmp.ne.s32.totalorder %s852_s19, 0 }
 0x271   : > { %p867_p0 = scmp.ge.s32.totalorder %s606_s15, 2  ;;  %s326_s27 = scalar_lea.sflag [#allocation4], %s325_s22 }
 0x273   : > { %p434_p5 = pnand %p867_p0, %p866_p13 }
 0x275   : > { %589 = dma.done.wait (!%p434_p5), %s326_s27, 128  }
 0x276   : > { %591 = vsyncadd (!%p434_p5), %s326_s27, 4294967168  ;;  %p17_p10 = scmp.ge.s32.totalorder %s681_s23, 4   ;;  %s868_s12 = smov %s598_s13 }
 0x277   : > { %s869_s13 = smov %s602_s14  ;;  %s870_s14 = smov %s717_s11 }
 0x278   : > { %s871_s15 = smov %s681_s23  ;;  %19 = sbr.rel (!%p17_p10) target bundleno = 6 (0x6), region = 81 }
 0x27f   :  { %331 = vsyncpa [#allocation3], 1 }
 0x280   :  { %333 = vsyncpa [#allocation3 + $0x1], 1 }
 0x281   :  { %334 = vsyncpa [#allocation6], 1 }
 0x282   :  { %335 = vsyncpa [#allocation4], 1 }
 0x283   :  { %337 = vsyncpa [#allocation4 + $0x1], 1 }

</bundles_post_ra>
